<compile_context>
chip_gen: v5e
topology: v5e:2x2
jax: 0.10.0
libtpu: 0.0.40
codegen_flags: <defaults>
</compile_context>

<pallas_src>
import inspect

import jax
import jax.numpy as jnp
from jax.experimental import pallas as pl
from jax.experimental.pallas import tpu as pltpu


# ---------------------------------------------------------------------------
# Helpers
# ---------------------------------------------------------------------------

def _round_up(x, m):
    return (x + m - 1) // m * m


def _cdiv(a, b):
    return (a + b - 1) // b


def _supports_buffered():
    """Explicit capability check for BlockSpec(pipeline_mode=pl.Buffered(...)).

    (A try/except around BlockSpec construction is useless: a missing
    pipeline_mode feature would only surface at pallas_call lowering.)"""
    try:
        return (hasattr(pl, "Buffered")
                and "pipeline_mode" in inspect.signature(pl.BlockSpec).parameters)
    except (TypeError, ValueError):
        return False


_HAS_BUFFERED = _supports_buffered()


def _const_spec(shape):
    """BlockSpec for a VMEM-resident constant (weight / bias).

    Its block index never changes across the grid, so single-buffer it:
    a second pipeline buffer would only double the resident VMEM footprint
    (matters most against v7x's 64 MiB / ~32 MiB scoped default)."""
    if _HAS_BUFFERED:
        return pl.BlockSpec(shape, lambda i: (0, 0), pipeline_mode=pl.Buffered(1))
    return pl.BlockSpec(shape, lambda i: (0, 0))


def _vmem_limit_bytes():
    """~75% of the detected generation's physical VMEM:
    v7x (64 MiB) -> 48 MiB; v5e/v6e (128 MiB) -> 96 MiB."""
    cap = 64 * 1024 * 1024
    try:
        cap = int(getattr(pltpu.get_tpu_info(), "vmem_capacity_bytes", cap))
    except Exception:  # not on TPU / interpret mode / older JAX
        pass
    return (cap * 3) // 4


# ---------------------------------------------------------------------------
# Kernel
# ---------------------------------------------------------------------------

def _make_kernel(num_linear):
    """Fused Hadamard + MLP over one row tile.

    Ref order: (pair_feats, w0, b0, ..., w_{L-1}, b_{L-1}, out)."""

    def kernel(x_ref, *refs):
        out_ref = refs[-1]
        param_refs = refs[:-1]

        # Hadamard product in f32 (v5e has no bf16 VALU path). x_ref is the
        # stacked (2, tile_rows, D1) block; slicing the leading dim is free.
        h = x_ref[0].astype(jnp.float32) * x_ref[1].astype(jnp.float32)

        for i in range(num_linear):
            w_ref = param_refs[2 * i]
            b_ref = param_refs[2 * i + 1]
            z = jnp.dot(h.astype(w_ref.dtype), w_ref[...],
                        preferred_element_type=jnp.float32) + b_ref[...]
            # ReLU after every layer except the output layer; dropout(p=0) is
            # an identity in eval mode and therefore omitted.
            h = jnp.maximum(z, 0.0) if i < num_linear - 1 else z

        # Direct (tile_rows, n_tasks) store: n_tasks is tiny, so the masked
        # lane-sparse stores are cheaper than transpose-in + a wrapper-side
        # transpose-back HBM pass.
        out_ref[...] = h.astype(out_ref.dtype)

    return kernel


# ---------------------------------------------------------------------------
# Parameter preparation / tile selection
# ---------------------------------------------------------------------------

def _pad_params(params, *, lane_pad=128, weight_dtype=jnp.bfloat16):
    """Zero-pad each hidden layer's fan_out up to a multiple of 128 lanes.
    Exact math: padded hidden units are relu(0 + 0) = 0 and the next layer's
    padded weight rows are zero. The streamed feature width D1 and the final
    n_tasks are NOT padded (padding them would inflate HBM traffic / stores
    for no gain). Weights -> weight_dtype, biases stay f32."""
    ws = list(params[0::2])
    bs = list(params[1::2])
    n = len(ws)
    padded = []
    prev_out = ws[0].shape[0]          # D1: streamed, never padded
    for i, (w, b) in enumerate(zip(ws, bs)):
        fan_in, fan_out = w.shape
        tgt_in = prev_out
        tgt_out = _round_up(fan_out, lane_pad) if i < n - 1 else fan_out
        w_p = jnp.zeros((tgt_in, tgt_out), jnp.float32).at[:fan_in, :fan_out].set(
            w.astype(jnp.float32))
        b_p = jnp.zeros((1, tgt_out), jnp.float32).at[:, :fan_out].set(
            b.reshape(1, -1).astype(jnp.float32))
        padded.append((w_p.astype(weight_dtype), b_p))
        prev_out = tgt_out
    return padded


def _pick_tile_rows(P, D1, n_tasks, h_pad_max, resident_weight_bytes,
                    vmem_limit, buffered_weights, max_tile_rows):
    """Auto-size the row tile from a per-step VMEM budget."""
    resident = resident_weight_bytes * (1 if buffered_weights else 2)
    budget = max(vmem_limit - resident - (4 << 20), 2 << 20)   # 4 MiB slack
    per_row = (
        2 * 2 * D1 * 2        # stacked (2, tile, D1) bf16 features, 2 buffers
        + 2 * n_tasks * 4     # f32 output blocks, 2 buffers
        + 4 * D1              # f32 Hadamard product live in-kernel
        + 10 * h_pad_max      # ~2 f32 activations + 1 bf16 copy of widest hidden
    )
    tile = budget // max(per_row, 1)
    tile = max(128, min(max_tile_rows, (tile // 128) * 128))

    p_aligned = _round_up(P, 128)
    tile = min(tile, p_aligned)          # never tile past the batch
    # Guarantee >= 2 grid steps whenever the batch allows: required for
    # dimension_semantics=("parallel",) to shard across v7x's 2 TensorCores;
    # costs only ~0.35us of extra step overhead on single-TC v5e/v6e.
    if p_aligned >= 256:
        tile = min(tile, _round_up(_cdiv(p_aligned, 2), 128))
    return max(tile, 128)


# ---------------------------------------------------------------------------
# Public entry points
# ---------------------------------------------------------------------------

def hadamard_link_predict_stacked(pair_feats, params, *,
                                  weight_dtype=jnp.bfloat16,
                                  max_tile_rows=2048,
                                  tile_rows=None):
    """Core fused kernel.

    pair_feats : (2, P, D1) array, pair_feats[0]=left, pair_feats[1]=right
                 (bf16 recommended; any float dtype accepted).
    params     : (w0, b0, ..., w_last, b_last), weights stored (in, out).
    Returns (P, n_tasks) float32 logits."""
    assert pair_feats.ndim == 3 and pair_feats.shape[0] == 2
    _, P, D1 = pair_feats.shape
    num_linear = len(params) // 2
    assert num_linear >= 2, "module requires num_layers >= 2"
    n_tasks = params[-2].shape[1]
    assert params[0].shape[0] == D1

    padded = _pad_params(params, weight_dtype=weight_dtype)
    hidden_pads = [w.shape[1] for w, _ in padded[:-1]]
    h_pad_max = max(hidden_pads) if hidden_pads else n_tasks
    weight_bytes = int(sum(w.size * w.dtype.itemsize + b.size * 4
                           for w, b in padded))

    vmem_limit = _vmem_limit_bytes()
    if tile_rows is None:
        tile_rows = _pick_tile_rows(P, D1, n_tasks, h_pad_max, weight_bytes,
                                    vmem_limit, _HAS_BUFFERED, max_tile_rows)
    else:
        tile_rows = max(128, _round_up(int(tile_rows), 128))

    grid = (_cdiv(P, tile_rows),)

    # Features + output: default 2-deep pipelining. (If profiling ever shows
    # exposed DMA at small tiles, bump features to pl.Buffered(3) — feature
    # tiles are tiny — but prefer larger tile_rows first.)
    feat_spec = pl.BlockSpec((2, tile_rows, D1), lambda i: (0, i, 0))
    out_spec = pl.BlockSpec((tile_rows, n_tasks), lambda i: (i, 0))

    param_args, param_specs = [], []
    for w_p, b_p in padded:
        param_args += [w_p, b_p]
        param_specs += [_const_spec(w_p.shape), _const_spec(b_p.shape)]

    # Advisory cost estimate so XLA schedules the custom call sensibly.
    flops = P * D1                       # Hadamard
    fan_in = D1
    for w_p, _ in padded:
        flops += 2 * P * fan_in * w_p.shape[1] + P * w_p.shape[1]
        fan_in = w_p.shape[1]
    bytes_accessed = (pair_feats.size * pair_feats.dtype.itemsize
                      + weight_bytes
                      + P * n_tasks * 4)

    return pl.pallas_call(
        _make_kernel(num_linear),
        out_shape=jax.ShapeDtypeStruct((P, n_tasks), jnp.float32),
        grid_spec=pltpu.PrefetchScalarGridSpec(
            num_scalar_prefetch=0,
            grid=grid,
            in_specs=[feat_spec] + param_specs,
            out_specs=out_spec,
        ),
        compiler_params=pltpu.CompilerParams(
            dimension_semantics=("parallel",),   # shard row tiles across TCs
            vmem_limit_bytes=int(vmem_limit),
        ),
        cost_estimate=pl.CostEstimate(
            flops=int(flops), transcendentals=0,
            bytes_accessed=int(bytes_accessed)),
    )(pair_feats, *param_args)


def hadamard_link_predictor(left_feats, right_feats, params, *, dropout=0.0,
                            weight_dtype=jnp.bfloat16):
    """Drop-in forward of the PyTorch module (eval mode).

    left/right_feats: (P, D1). Returns (P, n_tasks) float32 logits.
    The stack + bf16 downcast below is ONE fused XLA pass (same HBM cost as
    two astypes); production callers holding pre-stacked bf16 pair features
    should call hadamard_link_predict_stacked() directly and skip it."""
    if dropout != 0.0:
        # TODO(synk): training-mode dropout is not fused; eval / p=0 only.
        raise NotImplementedError("dropout > 0 (training mode) is not supported")
    P, D1 = left_feats.shape
    assert right_feats.shape == (P, D1)
    pair = jnp.stack([left_feats, right_feats]).astype(jnp.bfloat16)
    return hadamard_link_predict_stacked(pair, params, weight_dtype=weight_dtype)


# ---------------------------------------------------------------------------
# Init + references (for testing)
# ---------------------------------------------------------------------------

def init_params(key, in_feats, hidden_feats, num_layers, n_tasks):
    """PyTorch-Linear-like uniform init; weights stored (in, out) so the kernel
    computes x @ W directly."""
    assert num_layers >= 2
    dims = [in_feats] + [hidden_feats] * (num_layers - 1) + [n_tasks]
    params = []
    keys = jax.random.split(key, len(dims) - 1)
    for k, fan_in, fan_out in zip(keys, dims[:-1], dims[1:]):
        kw, kb = jax.random.split(k)
        bound = fan_in ** -0.5
        w = jax.random.uniform(kw, (fan_in, fan_out), jnp.float32, -bound, bound)
        b = jax.random.uniform(kb, (fan_out,), jnp.float32, -bound, bound)
        params += [w, b]
    return tuple(params)


def reference_forward(left, right, params):
    """Exact f32 forward of the PyTorch module (eval mode)."""
    ws, bs = params[0::2], params[1::2]
    h = left * right
    for i, (w, b) in enumerate(zip(ws, bs)):
        h = h @ w + b
        if i < len(ws) - 1:
            h = jnp.maximum(h, 0.0)
    return h


def reference_forward_bf16(left, right, params):
    """Reference following the kernel's bf16-stream / f32-accumulate path."""
    ws, bs = params[0::2], params[1::2]
    h = (left.astype(jnp.bfloat16).astype(jnp.float32)
         * right.astype(jnp.bfloat16).astype(jnp.float32))
    for i, (w, b) in enumerate(zip(ws, bs)):
        z = jnp.dot(h.astype(jnp.bfloat16), w.astype(jnp.bfloat16),
                    preferred_element_type=jnp.float32) + b.astype(jnp.float32)
        h = jnp.maximum(z, 0.0) if i < len(ws) - 1 else z
    return h


# ---------------------------------------------------------------------------
# Self-test
# ---------------------------------------------------------------------------

if __name__ == "__main__":
    key = jax.random.PRNGKey(0)

    # --- Config A: P=200, in=32, hidden=48, 3 layers, 3 tasks.
    # Exercises hidden-width padding, a 2-step grid (megacore path) and a
    # ragged last row-tile (200 = 128 + 72) with no wrapper-side padding.
    P, in_feats, hidden_feats, num_layers, n_tasks = 200, 32, 48, 3, 3
    k_l, k_r, k_p, k2 = jax.random.split(key, 4)
    left = jax.random.normal(k_l, (P, in_feats), jnp.float32)
    right = jax.random.normal(k_r, (P, in_feats), jnp.float32)
    params = init_params(k_p, in_feats, hidden_feats, num_layers, n_tasks)

    out = jax.block_until_ready(hadamard_link_predictor(left, right, params))
    assert out.shape == (P, n_tasks)

    ref_bf16 = reference_forward_bf16(left, right, params)
    assert jnp.allclose(out, ref_bf16, atol=2e-3, rtol=2e-3), "mismatch vs bf16 ref"
    ref_f32 = reference_forward(left, right, params)
    assert jnp.allclose(out, ref_f32, atol=5e-2, rtol=5e-2), "mismatch vs f32 ref"

    # Alternate tiling (single ragged 256-row tile, grid=1) must agree exactly.
    pair = jnp.stack([left, right]).astype(jnp.bfloat16)
    out_one = jax.block_until_ready(
        hadamard_link_predict_stacked(pair, params, tile_rows=256))
    assert jnp.allclose(out, out_one, atol=1e-5, rtol=1e-5), "tiling mismatch"

    # Exact-weight (f32) variant: only feature bf16 rounding differs from ref.
    out_f32w = jax.block_until_ready(
        hadamard_link_predictor(left, right, params, weight_dtype=jnp.float32))
    assert jnp.allclose(out_f32w, ref_f32, atol=5e-2, rtol=5e-2), "f32-weight mismatch"

    # --- Config B: minimal depth (2 layers), single task, P<128 single ragged
    # tile. Covers n_tasks=1 output blocks and the num_layers=2 path.
    P2, in2, hid2, nl2, nt2 = 96, 32, 64, 2, 1
    k_l2, k_r2, k_p2 = jax.random.split(k2, 3)
    left2 = jax.random.normal(k_l2, (P2, in2), jnp.float32)
    right2 = jax.random.normal(k_r2, (P2, in2), jnp.float32)
    params2 = init_params(k_p2, in2, hid2, nl2, nt2)

    out2 = jax.block_until_ready(hadamard_link_predictor(left2, right2, params2))
    assert out2.shape == (P2, nt2)
    assert jnp.allclose(out2, reference_forward_bf16(left2, right2, params2),
                        atol=2e-3, rtol=2e-3), "config B mismatch"

    print("KERNEL_OK")
</pallas_src>

<mosaic_0001>
module attributes {stable_mosaic.version = 11 : i64} {
  func.func @kernel(%arg0: i32, %arg1: memref<2x128x32xbf16, #tpu.memory_space<vmem>>, %arg2: memref<32x128xbf16, #tpu.memory_space<vmem>>, %arg3: memref<1x128xf32, #tpu.memory_space<vmem>>, %arg4: memref<128x128xbf16, #tpu.memory_space<vmem>>, %arg5: memref<1x128xf32, #tpu.memory_space<vmem>>, %arg6: memref<128x3xbf16, #tpu.memory_space<vmem>>, %arg7: memref<1x3xf32, #tpu.memory_space<vmem>>, %arg8: memref<128x3xf32, #tpu.memory_space<vmem>>) attributes {dimension_semantics = [#tpu.dimension_semantics<parallel>], iteration_bounds = array<i64: 2>, scalar_prefetch = 0 : i64, scratch_operands = 0 : i64, tpu.core_type = #tpu.core_type<tc>, window_params = [{transform_indices = @transform_0, window_bounds = array<i64: 2, 128, 32>}, {pipeline_mode = #tpu.pipeline_mode<synchronous>, transform_indices = @transform_1, window_bounds = array<i64: 32, 128>}, {pipeline_mode = #tpu.pipeline_mode<synchronous>, transform_indices = @transform_2, window_bounds = array<i64: 1, 128>}, {pipeline_mode = #tpu.pipeline_mode<synchronous>, transform_indices = @transform_3, window_bounds = array<i64: 128, 128>}, {pipeline_mode = #tpu.pipeline_mode<synchronous>, transform_indices = @transform_4, window_bounds = array<i64: 1, 128>}, {pipeline_mode = #tpu.pipeline_mode<synchronous>, transform_indices = @transform_5, window_bounds = array<i64: 128, 3>}, {pipeline_mode = #tpu.pipeline_mode<synchronous>, transform_indices = @transform_6, window_bounds = array<i64: 1, 3>}, {transform_indices = @transform_7, window_bounds = array<i64: 128, 3>}]} {
    %c0 = arith.constant 0 : index
    %c0_0 = arith.constant 0 : index
    %c0_1 = arith.constant 0 : index
    %0 = vector.load %arg1[%c0, %c0_0, %c0_1] : memref<2x128x32xbf16, #tpu.memory_space<vmem>>, vector<1x128x32xbf16>
    %1 = vector.shape_cast %0 : vector<1x128x32xbf16> to vector<128x32xbf16>
    %2 = arith.extf %1 : vector<128x32xbf16> to vector<128x32xf32>
    %c1 = arith.constant 1 : index
    %c0_2 = arith.constant 0 : index
    %c0_3 = arith.constant 0 : index
    %3 = vector.load %arg1[%c1, %c0_2, %c0_3] : memref<2x128x32xbf16, #tpu.memory_space<vmem>>, vector<1x128x32xbf16>
    %4 = vector.shape_cast %3 : vector<1x128x32xbf16> to vector<128x32xbf16>
    %5 = arith.extf %4 : vector<128x32xbf16> to vector<128x32xf32>
    %6 = arith.mulf %2, %5 : vector<128x32xf32>
    %7 = arith.truncf %6 : vector<128x32xf32> to vector<128x32xbf16>
    %c0_4 = arith.constant 0 : index
    %c0_5 = arith.constant 0 : index
    %8 = vector.load %arg2[%c0_4, %c0_5] : memref<32x128xbf16, #tpu.memory_space<vmem>>, vector<32x128xbf16>
    %cst = arith.constant dense<0.000000e+00> : vector<128x128xf32>
    %9 = tpu.matmul %7, %8, %cst {dimension_numbers = #tpu.dot_dimension_numbers<[1], [0], [0], [1], [0, 0, 1, 1], [], []>} : vector<128x32xbf16>, vector<32x128xbf16>, vector<128x128xf32> -> vector<128x128xf32>
    %c0_6 = arith.constant 0 : index
    %c0_7 = arith.constant 0 : index
    %10 = vector.load %arg3[%c0_6, %c0_7] : memref<1x128xf32, #tpu.memory_space<vmem>>, vector<1x128xf32>
    %11 = vector.broadcast %10 : vector<1x128xf32> to vector<128x128xf32>
    %12 = arith.addf %9, %11 : vector<128x128xf32>
    %cst_8 = arith.constant 0.000000e+00 : f32
    %13 = vector.broadcast %cst_8 : f32 to vector<128x128xf32>
    %14 = arith.maximumf %12, %13 : vector<128x128xf32>
    %15 = arith.truncf %14 : vector<128x128xf32> to vector<128x128xbf16>
    %c0_9 = arith.constant 0 : index
    %c0_10 = arith.constant 0 : index
    %16 = vector.load %arg4[%c0_9, %c0_10] : memref<128x128xbf16, #tpu.memory_space<vmem>>, vector<128x128xbf16>
    %cst_11 = arith.constant dense<0.000000e+00> : vector<128x128xf32>
    %17 = tpu.matmul %15, %16, %cst_11 {dimension_numbers = #tpu.dot_dimension_numbers<[1], [0], [0], [1], [0, 0, 1, 1], [], []>} : vector<128x128xbf16>, vector<128x128xbf16>, vector<128x128xf32> -> vector<128x128xf32>
    %c0_12 = arith.constant 0 : index
    %c0_13 = arith.constant 0 : index
    %18 = vector.load %arg5[%c0_12, %c0_13] : memref<1x128xf32, #tpu.memory_space<vmem>>, vector<1x128xf32>
    %19 = vector.broadcast %18 : vector<1x128xf32> to vector<128x128xf32>
    %20 = arith.addf %17, %19 : vector<128x128xf32>
    %cst_14 = arith.constant 0.000000e+00 : f32
    %21 = vector.broadcast %cst_14 : f32 to vector<128x128xf32>
    %22 = arith.maximumf %20, %21 : vector<128x128xf32>
    %23 = arith.truncf %22 : vector<128x128xf32> to vector<128x128xbf16>
    %c0_15 = arith.constant 0 : index
    %c0_16 = arith.constant 0 : index
    %24 = vector.load %arg6[%c0_15, %c0_16] : memref<128x3xbf16, #tpu.memory_space<vmem>>, vector<128x3xbf16>
    %cst_17 = arith.constant dense<0.000000e+00> : vector<128x3xf32>
    %25 = tpu.matmul %23, %24, %cst_17 {dimension_numbers = #tpu.dot_dimension_numbers<[1], [0], [0], [1], [0, 0, 1, 1], [], []>} : vector<128x128xbf16>, vector<128x3xbf16>, vector<128x3xf32> -> vector<128x3xf32>
    %c0_18 = arith.constant 0 : index
    %c0_19 = arith.constant 0 : index
    %26 = vector.load %arg7[%c0_18, %c0_19] : memref<1x3xf32, #tpu.memory_space<vmem>>, vector<1x3xf32>
    %27 = vector.broadcast %26 : vector<1x3xf32> to vector<128x3xf32>
    %28 = arith.addf %25, %27 : vector<128x3xf32>
    %c0_20 = arith.constant 0 : index
    %c0_21 = arith.constant 0 : index
    %29 = vector.load %arg8[%c0_20, %c0_21] : memref<128x3xf32, #tpu.memory_space<vmem>>, vector<128x3xf32>
    tpu.vector_store %arg8[%c0_20, %c0_21], %28 {strides = array<i32>} : memref<128x3xf32, #tpu.memory_space<vmem>>, vector<128x3xf32>,
    return
  }
  func.func @transform_0(%arg0: i32) -> (i32, i32, i32) {
    %c0_i32 = arith.constant 0 : i32
    %c0_i32_0 = arith.constant 0 : i32
    %c0_i32_1 = arith.constant 0 : i32
    return %c0_i32, %arg0, %c0_i32_0 : i32, i32, i32
  }
  func.func @transform_1(%arg0: i32) -> (i32, i32) {
    %c0_i32 = arith.constant 0 : i32
    %c0_i32_0 = arith.constant 0 : i32
    %c0_i32_1 = arith.constant 0 : i32
    return %c0_i32, %c0_i32_0 : i32, i32
  }
  func.func @transform_2(%arg0: i32) -> (i32, i32) {
    %c0_i32 = arith.constant 0 : i32
    %c0_i32_0 = arith.constant 0 : i32
    %c0_i32_1 = arith.constant 0 : i32
    return %c0_i32, %c0_i32_0 : i32, i32
  }
  func.func @transform_3(%arg0: i32) -> (i32, i32) {
    %c0_i32 = arith.constant 0 : i32
    %c0_i32_0 = arith.constant 0 : i32
    %c0_i32_1 = arith.constant 0 : i32
    return %c0_i32, %c0_i32_0 : i32, i32
  }
  func.func @transform_4(%arg0: i32) -> (i32, i32) {
    %c0_i32 = arith.constant 0 : i32
    %c0_i32_0 = arith.constant 0 : i32
    %c0_i32_1 = arith.constant 0 : i32
    return %c0_i32, %c0_i32_0 : i32, i32
  }
  func.func @transform_5(%arg0: i32) -> (i32, i32) {
    %c0_i32 = arith.constant 0 : i32
    %c0_i32_0 = arith.constant 0 : i32
    %c0_i32_1 = arith.constant 0 : i32
    return %c0_i32, %c0_i32_0 : i32, i32
  }
  func.func @transform_6(%arg0: i32) -> (i32, i32) {
    %c0_i32 = arith.constant 0 : i32
    %c0_i32_0 = arith.constant 0 : i32
    %c0_i32_1 = arith.constant 0 : i32
    return %c0_i32, %c0_i32_0 : i32, i32
  }
  func.func @transform_7(%arg0: i32) -> (i32, i32) {
    %c0_i32 = arith.constant 0 : i32
    %c0_i32_0 = arith.constant 0 : i32
    return %arg0, %c0_i32 : i32, i32
  }
}

</mosaic_0001>

<bundles_post_ra>
// kernel: tpu_custom_call.1
= control target key start
LH: loop header
LB: loop body
LE: loop exit
PB: predicated region body
PF: predicated region fallthrough
CT: control target
= control target key end

     0   :  { %s1986_s24 = smov 0   ;;  %s1988_s25 = smov 0   ;;  %s2411_s0 = inlined_call_operand.vmem [shape: bf16[2,200,32], index: 0, kind: input, shape index: {}]   ;;  %s2412_s1 = inlined_call_operand.vmem [shape: bf16[32,128], index: 1, kind: input, shape index: {}]   ;;  %s2413_s2 = inlined_call_operand.vmem [shape: f32[1,128], index: 2, kind: input, shape index: {}]   ;;  %s2414_s3 = inlined_call_operand.vmem [shape: bf16[128,128], index: 3, kind: input, shape index: {}]   ;;  %s2415_s4 = inlined_call_operand.vmem [shape: f32[1,128], index: 4, kind: input, shape index: {}]   ;;  %s2416_s5 = inlined_call_operand.vmem [shape: bf16[128,3], index: 5, kind: input, shape index: {}]   ;;  %s2417_s6 = inlined_call_operand.vmem [shape: f32[1,3], index: 6, kind: input, shape index: {}]   ;;  %s2418_s7 = inlined_call_operand.vmem [shape: f32[200,3], index: 7, kind: output, shape index: {}]  }
   0x1   :  { %s1990_s26 = smov 0  }
   0x2 LB: > { %s2002_s27 = sadd.s32 4294967295, %s1880_s26   ;;  %s2005_s28 = sadd.s32 1, %s1880_s26   ;;  %s1880_s26 = sphi %s1990_s26, %s2432_s26   ;;  %s1876_s25 = sphi %s1988_s25, %s2431_s25   ;;  %s1872_s24 = sphi %s1986_s24, %s2430_s24  }
   0x3   : > { %s21_s29 = ssub.s32 %s1880_s26, %s2005_s28  ;;  %s24_s30 = sadd.s32 1, %s1876_s25 }
   0x4   : > { %p22_p0 = scmp.eq.s32.totalorder %s21_s29, 0  ;;  %p31_p1 = scmp.ne.s32.totalorder %s1876_s25, %s1872_s24 }
   0x5   : > { %p32_p2 = scmp.eq.s32.totalorder %s1880_s26, 0  ;;  %p187_p3 = scmp.eq.s32.totalorder %s2002_s27, 1 }
   0x6   : > { %s2015_s8 = scalar_select %p22_p0, %s1876_s25, %s24_s30  }
   0x7   : > { %p33_p4 = por %p32_p2, %p31_p1  ;;  %p2017_p5 = por %p187_p3, %p31_p1 }
   0x8   : > { %p1388_p6 = scmp.ge.s32.totalorder %s1880_s26, 2 }
   0xa   : > { %227 = sbr.rel (%p1388_p6) target bundleno = 84 (0x54), region = 40 }
   0xf   : > { %230 = sbr.rel (!%p33_p4) target bundleno = 84 (0x54), region = 44  ;;  %s232_s10 = sand.u32 (%p33_p4), 1, %s1876_s25  }
  0x10   : > { %s1390_s11 = sshll.u32 (%p33_p4), %s1880_s26, 4  ;;  %s1389_s12 = sshll.u32 (%p33_p4), %s232_s10, 7 }
  0x11   : > { %s236_s13 = ssub.s32 (%p33_p4), 25, %s1390_s11  ;;  %s1520_s14 = sshll.u32 (%p33_p4), %s1880_s26, 6 }
  0x12   : > { %p237_p7 = scmp.lt.s32.totalorder (%p33_p4), %s236_s13, 16  ;;  %s2030_s17 = scalar_lea.vmem (%p33_p4), %s2411_s0, %s1520_s14  }
  0x13   : > { %s2033_s19 = scalar_lea.vmem (%p33_p4), [#allocation2], %s1389_s12  }
  0x14   : > { %s2434_s13 = smov (!%p237_p7, %s236_s13), 16 }
  0x15   : > { %s1391_s18 = sshll.u32 %s2434_s13, 3 }
  0x16   : > { %p1394_p8 = scmp.eq.s32.totalorder %s1391_s18, 0 }
  0x17   : > { %s2036_s20 = sshrl.u32 (!%p1394_p8), %s2434_s13, 4 }
  0x18   : > { %245 = sbr.rel (%p1394_p8) target bundleno = 84 (0x54), region = 48  ;;  %p1395_p9 = scmp.le.s32.totalorder (!%p1394_p8), %s2036_s20, 0 }
  0x1d   : > { %1314 = sbr.rel (%p1395_p9) target bundleno = 67 (0x43), region = 214  ;;  %s2420_s21 = smov (!%p1395_p9), %s2033_s19 }
  0x1e   : > { %s2421_s22 = smov (!%p1395_p9), %s2030_s17  ;;  %s2045_s23 = smov (!%p1395_p9), 0  }
  0x1f   : > { %s2047_s29 = smov (!%p1395_p9), 0  }
  0x22 LB: >> { %v262_v0 = vld [vmem:[%s1888_s22] sm:$0xf]  ;;  %v264_v1 = vld [vmem:[%s1888_s22 + $0x4] sm:$0xf]  ;;  %v266_v2 = vld [vmem:[%s1888_s22 + $0x8] sm:$0xf]  ;;  %s1896_s29 = sphi %s2047_s29, %s256_s29   ;;  %s1892_s23 = sphi %s2045_s23, %s2424_s23   ;;  %s1888_s22 = sphi %s2421_s22, %s2423_s22   ;;  %s1884_s21 = sphi %s2420_s21, %s2422_s21  }
  0x23   : >> { %263 = vst [vmem:[%s1884_s21] sm:$0xf] %v262_v0  ;;  %v268_v3 = vld [vmem:[%s1888_s22 + $0xc] sm:$0xf]  ;;  %v270_v4 = vld [vmem:[%s1888_s22 + $0x10] sm:$0xf]  ;;  %s326_s30 = sadd.s32 1, %s1892_s23 }
  0x24   : >> { %265 = vst [vmem:[%s1884_s21 + $0x4] sm:$0xf] %v264_v1  ;;  %v272_v5 = vld [vmem:[%s1888_s22 + $0x14] sm:$0xf]  ;;  %v274_v6 = vld [vmem:[%s1888_s22 + $0x18] sm:$0xf]  ;;  %p327_p10 = scmp.ge.s32.totalorder %s326_s30, %s2036_s20 }
  0x25   : >> { %267 = vst [vmem:[%s1884_s21 + $0x8] sm:$0xf] %v266_v2  ;;  %v276_v7 = vld [vmem:[%s1888_s22 + $0x1c] sm:$0xf]  ;;  %v278_v8 = vld [vmem:[%s1888_s22 + $0x20] sm:$0xf] }
  0x26   : >> { %269 = vst [vmem:[%s1884_s21 + $0xc] sm:$0xf] %v268_v3  ;;  %v280_v9 = vld [vmem:[%s1888_s22 + $0x24] sm:$0xf]  ;;  %v282_v10 = vld [vmem:[%s1888_s22 + $0x28] sm:$0xf] }
  0x27   : >> { %271 = vst [vmem:[%s1884_s21 + $0x10] sm:$0xf] %v270_v4  ;;  %v284_v11 = vld [vmem:[%s1888_s22 + $0x2c] sm:$0xf]  ;;  %v286_v12 = vld [vmem:[%s1888_s22 + $0x30] sm:$0xf] }
  0x28   : >> { %273 = vst [vmem:[%s1884_s21 + $0x14] sm:$0xf] %v272_v5  ;;  %v288_v13 = vld [vmem:[%s1888_s22 + $0x34] sm:$0xf]  ;;  %v290_v14 = vld [vmem:[%s1888_s22 + $0x38] sm:$0xf] }
  0x29   : >> { %275 = vst [vmem:[%s1884_s21 + $0x18] sm:$0xf] %v274_v6  ;;  %v292_v15 = vld [vmem:[%s1888_s22 + $0x3c] sm:$0xf]  ;;  %v294_v16 = vld [vmem:[%s1888_s22 + $0x64] sm:$0xf] }
  0x2a   : >> { %277 = vst [vmem:[%s1884_s21 + $0x1c] sm:$0xf] %v276_v7  ;;  %v296_v17 = vld [vmem:[%s1888_s22 + $0x68] sm:$0xf]  ;;  %s2436_s30 = smov (%p327_p10, %s326_s30), 0  ;;  %s256_s29 = sadd.s32 1, %s1896_s29  }
  0x2b   : >> { %279 = vst [vmem:[%s1884_s21 + $0x20] sm:$0xf] %v278_v8  ;;  %v298_v18 = vld [vmem:[%s1888_s22 + $0x6c] sm:$0xf]  ;;  %v300_v19 = vld [vmem:[%s1888_s22 + $0x70] sm:$0xf]  ;;  %p255_p11 = scmp.ge.s32.totalorder %s256_s29, %s2036_s20  ;;  %s2424_s23 = smov %s2436_s30 }
  0x2c   : >> { %281 = vst [vmem:[%s1884_s21 + $0x24] sm:$0xf] %v280_v9  ;;  %s1396_s10 = sshll.u32 %s2436_s30, 6  ;;  %v302_v20 = vld [vmem:[%s1888_s22 + $0x74] sm:$0xf] }
  0x2d   : >> { %283 = vst [vmem:[%s1884_s21 + $0x28] sm:$0xf] %v282_v10  ;;  %s2106_s11 = scalar_lea.vmem %s2030_s17, %s1396_s10   ;;  %s332_s12 = scalar_lea.vmem %s2033_s19, %s1396_s10 [#allocation2]   ;;  %v304_v21 = vld [vmem:[%s1888_s22 + $0x78] sm:$0xf]  ;;  %v306_v22 = vld [vmem:[%s1888_s22 + $0x7c] sm:$0xf] }
  0x2e   : >> { %285 = vst [vmem:[%s1884_s21 + $0x2c] sm:$0xf] %v284_v11  ;;  %v308_v23 = vld [vmem:[%s1888_s22 + $0x80] sm:$0xf]  ;;  %v310_v24 = vld [vmem:[%s1888_s22 + $0x84] sm:$0xf] }
  0x2f   : >> { %287 = vst [vmem:[%s1884_s21 + $0x30] sm:$0xf] %v286_v12  ;;  %v312_v25 = vld [vmem:[%s1888_s22 + $0x88] sm:$0xf]  ;;  %v314_v26 = vld [vmem:[%s1888_s22 + $0x8c] sm:$0xf] }
  0x30   : >> { %289 = vst [vmem:[%s1884_s21 + $0x34] sm:$0xf] %v288_v13  ;;  %v316_v27 = vld [vmem:[%s1888_s22 + $0x90] sm:$0xf]  ;;  %v318_v28 = vld [vmem:[%s1888_s22 + $0x94] sm:$0xf] }
  0x31   : >> { %291 = vst [vmem:[%s1884_s21 + $0x38] sm:$0xf] %v290_v14  ;;  %v320_v29 = vld [vmem:[%s1888_s22 + $0x98] sm:$0xf]  ;;  %v322_v30 = vld [vmem:[%s1888_s22 + $0x9c] sm:$0xf] }
  0x32   : >> { %293 = vst [vmem:[%s1884_s21 + $0x3c] sm:$0xf] %v292_v15  ;;  %v324_v31 = vld [vmem:[%s1888_s22 + $0xa0] sm:$0xf]  ;;  %s2423_s22 = smov %s2106_s11 }
  0x33   : >> { %295 = vst [vmem:[%s1884_s21 + $0x40] sm:$0xf] %v294_v16 }
  0x34   : >> { %297 = vst [vmem:[%s1884_s21 + $0x44] sm:$0xf] %v296_v17 }
  0x35   : >> { %299 = vst [vmem:[%s1884_s21 + $0x48] sm:$0xf] %v298_v18 }
  0x36   : >> { %301 = vst [vmem:[%s1884_s21 + $0x4c] sm:$0xf] %v300_v19 }
  0x37   : >> { %303 = vst [vmem:[%s1884_s21 + $0x50] sm:$0xf] %v302_v20 }
  0x38   : >> { %305 = vst [vmem:[%s1884_s21 + $0x54] sm:$0xf] %v304_v21 }
  0x39   : >> { %307 = vst [vmem:[%s1884_s21 + $0x58] sm:$0xf] %v306_v22 }
  0x3a   : >> { %309 = vst [vmem:[%s1884_s21 + $0x5c] sm:$0xf] %v308_v23 }
  0x3b   : >> { %311 = vst [vmem:[%s1884_s21 + $0x60] sm:$0xf] %v310_v24 }
  0x3c   : >> { %313 = vst [vmem:[%s1884_s21 + $0x64] sm:$0xf] %v312_v25 }
  0x3d   : >> { %315 = vst [vmem:[%s1884_s21 + $0x68] sm:$0xf] %v314_v26 }
  0x3e   : >> { %317 = vst [vmem:[%s1884_s21 + $0x6c] sm:$0xf] %v316_v27  ;;  %258 = sbr.rel (!%p255_p11) target bundleno = 34 (0x22), region = 220 }
  0x3f   : >> { %319 = vst [vmem:[%s1884_s21 + $0x70] sm:$0xf] %v318_v28 }
  0x40   : >> { %321 = vst [vmem:[%s1884_s21 + $0x74] sm:$0xf] %v320_v29 }
  0x41   : >> { %323 = vst [vmem:[%s1884_s21 + $0x78] sm:$0xf] %v322_v30 }
  0x42   : >> { %325 = vst [vmem:[%s1884_s21 + $0x7c] sm:$0xf] %v324_v31  ;;  %s2422_s21 = smov %s332_s12 }
  0x43 PF: > { %s2147_s14 = sand.u32 15, %s2434_s13   ;;  %s1521_s15 = sshll.u32 %s2036_s20, 6 }
  0x44   : > { %s2151_s16 = scalar_lea.vmem %s2030_s17, %s1521_s15   ;;  %s339_s18 = scalar_lea.vmem %s2033_s19, %s1521_s15 [#allocation2]  }
  0x45   : > { %p1401_p12 = scmp.le.s32.totalorder %s2147_s14, 0 }
  0x46   : > { %s1898_s10 = smov (!%p1401_p12), %s339_s18   ;;  %s1902_s30 = smov (!%p1401_p12), %s2151_s16  }
  0x47   : > { %1328 = sbr.rel (%p1401_p12) target bundleno = 84 (0x54), region = 225  ;;  %s1906_s11 = smov (!%p1401_p12), 0  }
  0x48   : > { %s1910_s29 = smov (!%p1401_p12), 0  }
  0x4c LB: >> { %v349_v32 = vld [vmem:[%s1904_s30] sm:$0xf]  ;;  %v351_v33 = vld [vmem:[%s1904_s30 + $0x64] sm:$0xf]  ;;  %s353_s13 = sadd.s32 1, %s1908_s11  ;;  %s343_s29 = sadd.s32 1, %s1912_s29   ;;  %s1912_s29 = sphi %s1910_s29, %s343_s29   ;;  %s1908_s11 = sphi %s1906_s11, %s1907_s11   ;;  %s1904_s30 = sphi %s1902_s30, %s358_s30   ;;  %s1900_s10 = sphi %s1898_s10, %s359_s10  }
  0x4d   : >> { %350 = vst [vmem:[%s1900_s10] sm:$0xf] %v349_v32  ;;  %p354_p13 = scmp.ge.s32.totalorder %s353_s13, %s2147_s14  ;;  %p342_p0 = scmp.ge.s32.totalorder %s343_s29, %s2147_s14 }
  0x4e   : >> { %352 = vst [vmem:[%s1900_s10 + $0x40] sm:$0xf] %v351_v33 }
  0x4f   : >> { %s2438_s13 = smov (%p354_p13, %s353_s13), 0  ;;  %345 = sbr.rel (!%p342_p0) target bundleno = 76 (0x4c), region = 231 }
  0x50   : >> { %s1402_s17 = sshll.u32 %s2438_s13, 2  ;;  %s1907_s11 = smov %s2438_s13  }
  0x51   : >> { %s358_s30 = scalar_lea.vmem %s2151_s16, %s1402_s17   ;;  %s359_s10 = scalar_lea.vmem %s339_s18, %s1402_s17 [#allocation2]  }
  0x54 PF: > { %p1404_p1 = scmp.ge.s32.totalorder %s1880_s26, 1  ;;  %p514_p2 = scmp.lt.s32.totalorder %s1880_s26, 3 }
  0x56   : > { %p515_p3 = pnand %p1404_p1, %p514_p2 }
  0x57   : > { %s521_s21 = sand.u32 (!%p515_p3), 1, %s1872_s24  }
  0x58   : > { %518 = sbr.rel (%p515_p3) target bundleno = 691 (0x2b3), region = 106  ;;  %s2165_s22 = sshll.u32 (!%p515_p3), %s521_s21, 7 }
  0x59   : > { %s2171_s14 = scalar_lea.vmem (!%p515_p3), [#allocation2], %s2165_s22  ;;  %s2273_s18 = scalar_lea.vmem (!%p515_p3), [#allocation3], %s2165_s22  }
  0x5d   : > { %v1524_v34 = vld [vmem:[%s2412_s1 + $0x8] sm:$0xff]  ;;  %v1523_v35 = vld [vmem:[%s2412_s1] sm:$0xff]  ;;  %vm671_vm0 = vcmask 261120   ;;  %v1609_v54 = vld [vmem:[%s2171_s14 + $0x10] sm:$0xff]   ;;  %vm1027_vm1 = vcmask 23552   ;;  %s1504_s22 = sshll.u32 (%p2017_p5), %s2002_s27, 4 }
  0x5e   : > { %702 = vmatpush.bf16.msra.mxu0 %v1524_v34  ;;  %v1545_v36 = vld [vmem:[%s2171_s14] sm:$0xff]   ;;  %v1608_v45 = vld [vmem:[%s2171_s14 + $0x8] sm:$0xff]   ;;  %v1617_v55 = vld [vmem:[%s2171_s14 + $0x50] sm:$0xff]   ;;  %v1554_v56 = vunpack.c.l.bf16 %v1609_v54  ;;  %v1555_v57 = vunpack.c.h.bf16 %v1609_v54  ;;  %s1541_s10 = sshll.u32 (%p2017_p5), %s2002_s27, 7  ;;  %s1052_s30 = ssub.s32 (%p2017_p5), 25, %s1504_s22 }
  0x5f   : > { %v1615_v37 = vld [vmem:[%s2171_s14 + $0x40] sm:$0xff]   ;;  %v1546_v38 = vunpack.c.l.bf16 %v1545_v36  ;;  %v1547_v39 = vunpack.c.h.bf16 %v1545_v36  ;;  %v1616_v46 = vld [vmem:[%s2171_s14 + $0x48] sm:$0xff]   ;;  %v1550_v47 = vunpack.c.l.bf16 %v1608_v45  ;;  %v1551_v48 = vunpack.c.h.bf16 %v1608_v45  ;;  %v1610_v63 = vld [vmem:[%s2171_s14 + $0x18] sm:$0xff]   ;;  %s2314_s13 = scalar_lea.vmem (%p2017_p5), %s2418_s7, %s1541_s10   ;;  %p1053_p4 = scmp.lt.s32.totalorder (%p2017_p5), %s1052_s30, 16 }
  0x60   : > { %v1578_v40 = vunpack.c.l.bf16 %v1615_v37  ;;  %v1579_v41 = vunpack.c.h.bf16 %v1615_v37  ;;  %v1582_v49 = vunpack.c.l.bf16 %v1616_v46  ;;  %v1583_v50 = vunpack.c.h.bf16 %v1616_v46  ;;  %v1618_v0 = vld [vmem:[%s2171_s14 + $0x58] sm:$0xff]   ;;  %v1611_v8 = vld [vmem:[%s2171_s14 + $0x20] sm:$0xff]   ;;  %v1612_v18 = vld [vmem:[%s2171_s14 + $0x28] sm:$0xff]  }
  0x61   : > { %v1586_v58 = vunpack.c.l.bf16 %v1617_v55  ;;  %v1587_v59 = vunpack.c.h.bf16 %v1617_v55  ;;  %v1558_v1 = vunpack.c.l.bf16 %v1610_v63  ;;  %v1559_v2 = vunpack.c.h.bf16 %v1610_v63  ;;  %v1619_v9 = vld [vmem:[%s2171_s14 + $0x60] sm:$0xff]   ;;  %v1532_v17 = vld [vmem:[%s2414_s3 + $0x38] sm:$0xff]  ;;  %v1620_v19 = vld [vmem:[%s2171_s14 + $0x68] sm:$0xff]  }
  0x62   : > { %703 = vmatpush.bf16.msra.mxu0 %v1523_v35  ;;  %v627_v42 = vmul.f32 %v1578_v40, %v1546_v38  ;;  %v628_v43 = vmul.f32 %v1579_v41, %v1547_v39  ;;  %v629_v51 = vmul.f32 %v1582_v49, %v1550_v47  ;;  %v630_v52 = vmul.f32 %v1583_v50, %v1551_v48  ;;  %v1531_v27 = vld [vmem:[%s2414_s3 + $0x30] sm:$0xff]  ;;  %v1530_v30 = vld [vmem:[%s2414_s3 + $0x28] sm:$0xff]  ;;  %v1529_v35 = vld [vmem:[%s2414_s3 + $0x20] sm:$0xff] }
  0x63   : > { %v631_v60 = vmul.f32 %v1586_v58, %v1554_v56  ;;  %v632_v61 = vmul.f32 %v1587_v59, %v1555_v57  ;;  %v1590_v3 = vunpack.c.l.bf16 %v1618_v0  ;;  %v1591_v4 = vunpack.c.h.bf16 %v1618_v0  ;;  %837 = vmatpush.bf16.msra.mxu1 %v1532_v17  ;;  %1623 = vmatpush.bf16.msra.mxu3 %v1532_v17  ;;  %v1613_v28 = vld [vmem:[%s2171_s14 + $0x30] sm:$0xff]   ;;  %v1528_v38 = vld [vmem:[%s2414_s3 + $0x18] sm:$0xff]  ;;  %v1525_v48 = vld [vmem:[%s2414_s3] sm:$0xff] }
  0x64   : > { %v643_v44 = vpack.c.bf16 %v628_v43, %v627_v42  ;;  %v644_v53 = vpack.c.bf16 %v630_v52, %v629_v51  ;;  %v1562_v10 = vunpack.c.l.bf16 %v1611_v8  ;;  %v1563_v11 = vunpack.c.h.bf16 %v1611_v8  ;;  %v1621_v29 = vld [vmem:[%s2171_s14 + $0x70] sm:$0xff]   ;;  %v1614_v41 = vld [vmem:[%s2171_s14 + $0x38] sm:$0xff]   ;;  %v1526_v43 = vld [vmem:[%s2414_s3 + $0x8] sm:$0xff] }
  0x65   : > { %v645_v62 = vpack.c.bf16 %v632_v61, %v631_v60  ;;  %v633_v5 = vmul.f32 %v1590_v3, %v1558_v1  ;;  %v634_v6 = vmul.f32 %v1591_v4, %v1559_v2  ;;  %v1594_v12 = vunpack.c.l.bf16 %v1619_v9  ;;  %v1527_v40 = vld [vmem:[%s2414_s3 + $0x10] sm:$0xff]  ;;  %v1622_v42 = vld [vmem:[%s2171_s14 + $0x78] sm:$0xff]  }
  0x66   : > { %1431 = vmatmul.msk.bf16.vlgmr.msra.gmra.mxu0 %vm671_vm0, %v643_v44  ;;  %v1595_v13 = vunpack.c.h.bf16 %v1619_v9  ;;  %v1566_v20 = vunpack.c.l.bf16 %v1612_v18  ;;  %v1567_v21 = vunpack.c.h.bf16 %v1612_v18  ;;  %v1598_v22 = vunpack.c.l.bf16 %v1620_v19 }
  0x67   : > { %v646_v7 = vpack.c.bf16 %v634_v6, %v633_v5  ;;  %v635_v14 = vmul.f32 %v1594_v12, %v1562_v10  ;;  %v1599_v23 = vunpack.c.h.bf16 %v1620_v19  ;;  %838 = vmatpush.bf16.msra.mxu1 %v1531_v27  ;;  %1624 = vmatpush.bf16.msra.mxu3 %v1531_v27  ;;  %v1570_v31 = vunpack.c.l.bf16 %v1613_v28 }
  0x68   : > { %v636_v15 = vmul.f32 %v1595_v13, %v1563_v11  ;;  %v637_v24 = vmul.f32 %v1598_v22, %v1566_v20  ;;  %v1571_v32 = vunpack.c.h.bf16 %v1613_v28  ;;  %v1602_v33 = vunpack.c.l.bf16 %v1621_v29  ;;  %v1540_v28 = vld [vmem:[%s2416_s5 + $0x38] sm:$0xff] }
  0x69   : > { %v638_v25 = vmul.f32 %v1599_v23, %v1567_v21  ;;  %v1603_v34 = vunpack.c.h.bf16 %v1621_v29  ;;  %v1574_v44 = vunpack.c.l.bf16 %v1614_v41  ;;  %v1575_v45 = vunpack.c.h.bf16 %v1614_v41  ;;  %978 = vmatpush.bf16.msra.mxu2 %v1540_v28 }
  0x6a   : > { %v647_v16 = vpack.c.bf16 %v636_v15, %v635_v14  ;;  %v639_v36 = vmul.f32 %v1602_v33, %v1570_v31  ;;  %v1606_v46 = vunpack.c.l.bf16 %v1622_v42  ;;  %v1607_v47 = vunpack.c.h.bf16 %v1622_v42 }
  0x6b   : > { %v648_v26 = vpack.c.bf16 %v638_v25, %v637_v24  ;;  %839 = vmatpush.bf16.msra.mxu1 %v1530_v30  ;;  %1625 = vmatpush.bf16.msra.mxu3 %v1530_v30  ;;  %v640_v37 = vmul.f32 %v1603_v34, %v1571_v32  ;;  %v1539_v32 = vld [vmem:[%s2416_s5 + $0x30] sm:$0xff]  ;;  %v1538_v34 = vld [vmem:[%s2416_s5 + $0x28] sm:$0xff] }
  0x6c   : > { %v641_v49 = vmul.f32 %v1606_v46, %v1574_v44  ;;  %v642_v50 = vmul.f32 %v1607_v47, %v1575_v45  ;;  %v1534_v45 = vld [vmem:[%s2416_s5 + $0x8] sm:$0xff]  ;;  %v1533_v46 = vld [vmem:[%s2416_s5] sm:$0xff] }
  0x6d   : > { %v649_v39 = vpack.c.bf16 %v640_v37, %v639_v36  ;;  %979 = vmatpush.bf16.msra.mxu2 %v1539_v32 }
  0x6e   : > { %v650_v51 = vpack.c.bf16 %v642_v50, %v641_v49 }
  0x6f   : > { %840 = vmatpush.bf16.msra.mxu1 %v1529_v35  ;;  %1626 = vmatpush.bf16.msra.mxu3 %v1529_v35  ;;  %v1537_v35 = vld [vmem:[%s2416_s5 + $0x20] sm:$0xff] }
  0x71   : > { %980 = vmatpush.bf16.msra.mxu2 %v1538_v34 }
  0x73   : > { %841 = vmatpush.bf16.msra.mxu1 %v1528_v38  ;;  %1627 = vmatpush.bf16.msra.mxu3 %v1528_v38 }
  0x75   : > { %981 = vmatpush.bf16.msra.mxu2 %v1537_v35 }
  0x76   : > { %1432 = vmatmul.msk.bf16.gmra.mxu0 %vm671_vm0, %v644_v53  ;;  %v2224_v53 = vld [vmem:[%s2413_s2] ss:$0 sm:$0xff] }
  0x77   : > { %842 = vmatpush.bf16.msra.mxu1 %v1527_v40  ;;  %1628 = vmatpush.bf16.msra.mxu3 %v1527_v40 }
  0x7b   : > { %843 = vmatpush.bf16.msra.mxu1 %v1526_v43  ;;  %1629 = vmatpush.bf16.msra.mxu3 %v1526_v43  ;;  %v1535_v43 = vld [vmem:[%s2416_s5 + $0x10] sm:$0xff] }
  0x7f   : > { %844 = vmatpush.bf16.msra.mxu1 %v1525_v48  ;;  %1630 = vmatpush.bf16.msra.mxu3 %v1525_v48 }
  0x83   : > { %1631 = vmatpush.bf16.msrb.mxu3 %v1540_v28 }
  0x86   : > { %1433 = vmatmul.msk.bf16.gmra.mxu0 %vm671_vm0, %v645_v62 }
  0x87   : > { %1632 = vmatpush.bf16.msrb.mxu3 %v1539_v32 }
  0x8b   : > { %1633 = vmatpush.bf16.msrb.mxu3 %v1538_v34 }
  0x8f   : > { %1634 = vmatpush.bf16.msrb.mxu3 %v1537_v35 }
  0x96   : > { %1434 = vmatmul.msk.bf16.gmra.mxu0 %vm671_vm0, %v646_v7 }
  0xa6   : > { %1435 = vmatmul.msk.bf16.gmra.mxu0 %vm671_vm0, %v647_v16 }
  0xb6   : > { %1436 = vmatmul.msk.bf16.gmra.mxu0 %vm671_vm0, %v648_v26 }
  0xc6   : > { %1437 = vmatmul.msk.bf16.gmra.mxu0 %vm671_vm0, %v649_v39  ;;  %v1536_v39 = vld [vmem:[%s2416_s5 + $0x18] sm:$0xff] }
  0xc7   : > { %982 = vmatpush.bf16.msra.mxu2 %v1536_v39  ;;  %1635 = vmatpush.bf16.msrb.mxu3 %v1536_v39 }
  0xcb   : > { %983 = vmatpush.bf16.msra.mxu2 %v1535_v43  ;;  %1636 = vmatpush.bf16.msrb.mxu3 %v1535_v43 }
  0xcf   : > { %984 = vmatpush.bf16.msra.mxu2 %v1534_v45  ;;  %1637 = vmatpush.bf16.msrb.mxu3 %v1534_v45 }
  0xd3   : > { %985 = vmatpush.bf16.msra.mxu2 %v1533_v46  ;;  %1638 = vmatpush.bf16.msrb.mxu3 %v1533_v46  ;;  %v1793_v46 = vld [vmem:[%s2417_s6] ss:$0 sm:$0xff] }
  0xd6   : > { %1438 = vmatmul.msk.bf16.gmra.mxu0 %vm671_vm0, %v650_v51 }
  0xe3   : > { %v705_v52 = vpop.f32.mrf.mxu0 }
  0xe4   : > { %v706_v54 = vadd.f32 %v2224_v53, %v705_v52 }
  0xe6   : > { %v745_v57 = vmax.f32 %v706_v54, 0.0 }
  0xeb   : > { %v707_v55 = vpop.f32.mrf.mxu0 }
  0xec   : > { %v708_v56 = vadd.f32 %v2224_v53, %v707_v55  ;;  %v1792_v55 = vld [vmem:[%s2415_s4] ss:$0 sm:$0xff] }
  0xee   : > { %v746_v58 = vmax.f32 %v708_v56, 0.0 }
  0xf0   : > { %v761_v59 = vpack.c.bf16 %v746_v58, %v745_v57 }
  0xf2   : > { %845 = vmatmul.bf16.vlgmr.msra.gmra.mxu1 %v761_v59 }
  0xf3   : > { %v710_v60 = vpop.f32.mrf.mxu0 }
  0xf4   : > { %v711_v61 = vadd.f32 %v2224_v53, %v710_v60 }
  0xf6   : > { %v747_v0 = vmax.f32 %v711_v61, 0.0 }
  0xfb   : > { %v712_v62 = vpop.f32.mrf.mxu0 }
  0xfc   : > { %v713_v63 = vadd.f32 %v2224_v53, %v712_v62 }
  0xfe   : > { %v748_v1 = vmax.f32 %v713_v63, 0.0 }
 0x100   : > { %v762_v2 = vpack.c.bf16 %v748_v1, %v747_v0 }
 0x102   : > { %850 = vmatmul.bf16.gmra.mxu1 %v762_v2 }
 0x103   : > { %v715_v3 = vpop.f32.mrf.mxu0 }
 0x104   : > { %v716_v4 = vadd.f32 %v2224_v53, %v715_v3 }
 0x106   : > { %v749_v7 = vmax.f32 %v716_v4, 0.0 }
 0x10b   : > { %v717_v5 = vpop.f32.mrf.mxu0 }
 0x10c   : > { %v718_v6 = vadd.f32 %v2224_v53, %v717_v5 }
 0x10e   : > { %v750_v8 = vmax.f32 %v718_v6, 0.0 }
 0x110   : > { %v763_v9 = vpack.c.bf16 %v750_v8, %v749_v7 }
 0x112   : > { %855 = vmatmul.bf16.gmra.mxu1 %v763_v9 }
 0x113   : > { %v720_v10 = vpop.f32.mrf.mxu0 }
 0x114   : > { %v721_v11 = vadd.f32 %v2224_v53, %v720_v10 }
 0x116   : > { %v751_v14 = vmax.f32 %v721_v11, 0.0 }
 0x11b   : > { %v722_v12 = vpop.f32.mrf.mxu0 }
 0x11c   : > { %v723_v13 = vadd.f32 %v2224_v53, %v722_v12 }
 0x11e   : > { %v752_v15 = vmax.f32 %v723_v13, 0.0 }
 0x120   : > { %v764_v16 = vpack.c.bf16 %v752_v15, %v751_v14 }
 0x122   : > { %860 = vmatmul.bf16.gmra.mxu1 %v764_v16 }
 0x123   : > { %v725_v17 = vpop.f32.mrf.mxu0 }
 0x124   : > { %v726_v18 = vadd.f32 %v2224_v53, %v725_v17 }
 0x126   : > { %v753_v21 = vmax.f32 %v726_v18, 0.0 }
 0x12b   : > { %v727_v19 = vpop.f32.mrf.mxu0 }
 0x12c   : > { %v728_v20 = vadd.f32 %v2224_v53, %v727_v19 }
 0x12e   : > { %v754_v22 = vmax.f32 %v728_v20, 0.0 }
 0x130   : > { %v765_v23 = vpack.c.bf16 %v754_v22, %v753_v21 }
 0x132   : > { %865 = vmatmul.bf16.gmra.mxu1 %v765_v23 }
 0x133   : > { %v730_v24 = vpop.f32.mrf.mxu0 }
 0x134   : > { %v731_v25 = vadd.f32 %v2224_v53, %v730_v24 }
 0x136   : > { %v755_v29 = vmax.f32 %v731_v25, 0.0 }
 0x13b   : > { %v732_v26 = vpop.f32.mrf.mxu0 }
 0x13c   : > { %v733_v27 = vadd.f32 %v2224_v53, %v732_v26 }
 0x13e   : > { %v756_v30 = vmax.f32 %v733_v27, 0.0 }
 0x140   : > { %v766_v31 = vpack.c.bf16 %v756_v30, %v755_v29 }
 0x142   : > { %870 = vmatmul.bf16.gmra.mxu1 %v766_v31 }
 0x143   : > { %v735_v33 = vpop.f32.mrf.mxu0 }
 0x144   : > { %v736_v36 = vadd.f32 %v2224_v53, %v735_v33 }
 0x146   : > { %v757_v40 = vmax.f32 %v736_v36, 0.0 }
 0x14b   : > { %v737_v37 = vpop.f32.mrf.mxu0 }
 0x14c   : > { %v738_v38 = vadd.f32 %v2224_v53, %v737_v37 }
 0x14e   : > { %v758_v41 = vmax.f32 %v738_v38, 0.0 }
 0x150   : > { %v767_v42 = vpack.c.bf16 %v758_v41, %v757_v40 }
 0x152   : > { %875 = vmatmul.bf16.vlgmr.msra.gmra.mxu3 %v767_v42 }
 0x153   : > { %v740_v44 = vpop.f32.mrf.mxu0 }
 0x154   : > { %v741_v47 = vadd.f32 %v2224_v53, %v740_v44 }
 0x156   : > { %v759_v50 = vmax.f32 %v741_v47, 0.0 }
 0x15b   : > { %v742_v48 = vpop.f32.mrf.mxu0 }
 0x15c   : > { %v743_v49 = vadd.f32 %v2224_v53, %v742_v48 }
 0x15e   : > { %v760_v51 = vmax.f32 %v743_v49, 0.0 }
 0x160   : > { %v768_v52 = vpack.c.bf16 %v760_v51, %v759_v50 }
 0x162   : > { %880 = vmatmul.bf16.gmra.mxu3 %v768_v52 }
 0x16f   : > { %v846_v54 = vpop.f32.mrf.mxu1 }
 0x170   : > { %v847_v56 = vadd.f32 %v1792_v55, %v846_v54 }
 0x172   : > { %v886_v59 = vmax.f32 %v847_v56, 0.0 }
 0x177   : > { %v848_v57 = vpop.f32.mrf.mxu1 }
 0x178   : > { %v849_v58 = vadd.f32 %v1792_v55, %v848_v57 }
 0x17a   : > { %v887_v60 = vmax.f32 %v849_v58, 0.0 }
 0x17c   : > { %v902_v61 = vpack.c.bf16 %v887_v60, %v886_v59 }
 0x17e   : > { %986 = vmatmul.bf16.vlgmr.msra.gmra.mxu2 %v902_v61 }
 0x17f   : > { %v851_v62 = vpop.f32.mrf.mxu1 }
 0x180   : > { %v852_v63 = vadd.f32 %v1792_v55, %v851_v62 }
 0x182   : > { %v888_v1 = vmax.f32 %v852_v63, 0.0 }
 0x187   : > { %v853_v0 = vpop.f32.mrf.mxu1 }
 0x188   : > { %v854_v53 = vadd.f32 %v1792_v55, %v853_v0 }
 0x18a   : > { %v889_v2 = vmax.f32 %v854_v53, 0.0 }
 0x18c   : > { %v903_v3 = vpack.c.bf16 %v889_v2, %v888_v1 }
 0x18e   : > { %991 = vmatmul.bf16.gmra.mxu2 %v903_v3 }
 0x18f   : > { %v856_v4 = vpop.f32.mrf.mxu1 }
 0x190   : > { %v857_v5 = vadd.f32 %v1792_v55, %v856_v4 }
 0x192   : > { %v890_v8 = vmax.f32 %v857_v5, 0.0 }
 0x197   : > { %v858_v6 = vpop.f32.mrf.mxu1 }
 0x198   : > { %v859_v7 = vadd.f32 %v1792_v55, %v858_v6 }
 0x19a   : > { %v891_v9 = vmax.f32 %v859_v7, 0.0 }
 0x19c   : > { %v904_v10 = vpack.c.bf16 %v891_v9, %v890_v8 }
 0x19e   : > { %996 = vmatmul.bf16.gmra.mxu2 %v904_v10 }
 0x19f   : > { %v861_v11 = vpop.f32.mrf.mxu1 }
 0x1a0   : > { %v862_v12 = vadd.f32 %v1792_v55, %v861_v11 }
 0x1a2   : > { %v892_v15 = vmax.f32 %v862_v12, 0.0 }
 0x1a7   : > { %v863_v13 = vpop.f32.mrf.mxu1 }
 0x1a8   : > { %v864_v14 = vadd.f32 %v1792_v55, %v863_v13 }
 0x1aa   : > { %v893_v16 = vmax.f32 %v864_v14, 0.0 }
 0x1ac   : > { %v905_v17 = vpack.c.bf16 %v893_v16, %v892_v15 }
 0x1ae   : > { %1001 = vmatmul.bf16.gmra.mxu2 %v905_v17 }
 0x1af   : > { %v866_v18 = vpop.f32.mrf.mxu1 }
 0x1b0   : > { %v867_v19 = vadd.f32 %v1792_v55, %v866_v18 }
 0x1b2   : > { %v894_v22 = vmax.f32 %v867_v19, 0.0 }
 0x1b7   : > { %v868_v20 = vpop.f32.mrf.mxu1 }
 0x1b8   : > { %v869_v21 = vadd.f32 %v1792_v55, %v868_v20 }
 0x1ba   : > { %v895_v23 = vmax.f32 %v869_v21, 0.0 }
 0x1bc   : > { %v906_v24 = vpack.c.bf16 %v895_v23, %v894_v22 }
 0x1be   : > { %1006 = vmatmul.bf16.gmra.mxu2 %v906_v24 }
 0x1bf   : > { %v871_v25 = vpop.f32.mrf.mxu1 }
 0x1c0   : > { %v872_v26 = vadd.f32 %v1792_v55, %v871_v25 }
 0x1c2   : > { %v896_v29 = vmax.f32 %v872_v26, 0.0 }
 0x1c7   : > { %v873_v27 = vpop.f32.mrf.mxu1 }
 0x1c8   : > { %v874_v28 = vadd.f32 %v1792_v55, %v873_v27 }
 0x1ca   : > { %v897_v30 = vmax.f32 %v874_v28, 0.0 }
 0x1cc   : > { %v907_v31 = vpack.c.bf16 %v897_v30, %v896_v29 }
 0x1ce   : > { %1011 = vmatmul.bf16.gmra.mxu2 %v907_v31 }
 0x1d5   : > { %v876_v32 = vpop.f32.mrf.mxu3 }
 0x1d6   : > { %v877_v33 = vadd.f32 %v1792_v55, %v876_v32 }
 0x1d8   : > { %v898_v36 = vmax.f32 %v877_v33, 0.0 }
 0x1dd   : > { %v878_v34 = vpop.f32.mrf.mxu3 }
 0x1de   : > { %v879_v35 = vadd.f32 %v1792_v55, %v878_v34 }
 0x1e0   : > { %v899_v37 = vmax.f32 %v879_v35, 0.0 }
 0x1e2   : > { %v908_v38 = vpack.c.bf16 %v899_v37, %v898_v36 }
 0x1e4   : > { %1016 = vmatmul.bf16.vlgmr.msrb.gmra.mxu3 %v908_v38 }
 0x1e5   : > { %v881_v39 = vpop.f32.mrf.mxu3 }
 0x1e6   : > { %v882_v40 = vadd.f32 %v1792_v55, %v881_v39 }
 0x1e8   : > { %v900_v43 = vmax.f32 %v882_v40, 0.0 }
 0x1ed   : > { %v883_v41 = vpop.f32.mrf.mxu3 }
 0x1ee   : > { %v884_v42 = vadd.f32 %v1792_v55, %v883_v41 }
 0x1f0   : > { %v901_v44 = vmax.f32 %v884_v42, 0.0 }
 0x1f2   : > { %v909_v45 = vpack.c.bf16 %v901_v44, %v900_v43 }
 0x1f4   : > { %1021 = vmatmul.bf16.gmra.mxu3 %v909_v45 }
 0x201   : > { %v987_v47 = vpop.f32.mrf.mxu2 }
 0x202   : > { %v988_v48 = vadd.f32 %v1793_v46, %v987_v47 }
 0x204   : > { %1028 = vst.msk [vmem:[%s2273_s18] sm:$0xff] %vm1027_vm1, %v988_v48 }
 0x209   : > { %v989_v49 = vpop.f32.mrf.mxu2 }
 0x20a   : > { %v990_v50 = vadd.f32 %v1793_v46, %v989_v49 }
 0x20c   : > { %1029 = vst.msk [vmem:[%s2273_s18 + $0x8] sm:$0xff] %vm1027_vm1, %v990_v50 }
 0x211   : > { %v992_v51 = vpop.f32.mrf.mxu2 }
 0x212   : > { %v993_v52 = vadd.f32 %v1793_v46, %v992_v51 }
 0x214   : > { %1030 = vst.msk [vmem:[%s2273_s18 + $0x10] sm:$0xff] %vm1027_vm1, %v993_v52 }
 0x219   : > { %v994_v54 = vpop.f32.mrf.mxu2 }
 0x21a   : > { %v995_v55 = vadd.f32 %v1793_v46, %v994_v54 }
 0x21c   : > { %1031 = vst.msk [vmem:[%s2273_s18 + $0x18] sm:$0xff] %vm1027_vm1, %v995_v55 }
 0x221   : > { %v997_v56 = vpop.f32.mrf.mxu2 }
 0x222   : > { %v998_v57 = vadd.f32 %v1793_v46, %v997_v56 }
 0x224   : > { %1032 = vst.msk [vmem:[%s2273_s18 + $0x20] sm:$0xff] %vm1027_vm1, %v998_v57 }
 0x229   : > { %v999_v58 = vpop.f32.mrf.mxu2 }
 0x22a   : > { %v1000_v59 = vadd.f32 %v1793_v46, %v999_v58 }
 0x22c   : > { %1033 = vst.msk [vmem:[%s2273_s18 + $0x28] sm:$0xff] %vm1027_vm1, %v1000_v59 }
 0x231   : > { %v1002_v60 = vpop.f32.mrf.mxu2 }
 0x232   : > { %v1003_v61 = vadd.f32 %v1793_v46, %v1002_v60 }
 0x234   : > { %1034 = vst.msk [vmem:[%s2273_s18 + $0x30] sm:$0xff] %vm1027_vm1, %v1003_v61 }
 0x239   : > { %v1004_v62 = vpop.f32.mrf.mxu2 }
 0x23a   : > { %v1005_v63 = vadd.f32 %v1793_v46, %v1004_v62 }
 0x23c   : > { %1035 = vst.msk [vmem:[%s2273_s18 + $0x38] sm:$0xff] %vm1027_vm1, %v1005_v63 }
 0x241   : > { %v1007_v0 = vpop.f32.mrf.mxu2 }
 0x242   : > { %v1008_v53 = vadd.f32 %v1793_v46, %v1007_v0 }
 0x244   : > { %1036 = vst.msk [vmem:[%s2273_s18 + $0x40] sm:$0xff] %vm1027_vm1, %v1008_v53 }
 0x249   : > { %v1009_v1 = vpop.f32.mrf.mxu2 }
 0x24a   : > { %v1010_v2 = vadd.f32 %v1793_v46, %v1009_v1 }
 0x24c   : > { %1037 = vst.msk [vmem:[%s2273_s18 + $0x48] sm:$0xff] %vm1027_vm1, %v1010_v2 }
 0x251   : > { %v1012_v3 = vpop.f32.mrf.mxu2 }
 0x252   : > { %v1013_v4 = vadd.f32 %v1793_v46, %v1012_v3 }
 0x254   : > { %1038 = vst.msk [vmem:[%s2273_s18 + $0x50] sm:$0xff] %vm1027_vm1, %v1013_v4 }
 0x259   : > { %v1014_v5 = vpop.f32.mrf.mxu2 }
 0x25a   : > { %v1015_v6 = vadd.f32 %v1793_v46, %v1014_v5 }
 0x25c   : > { %1039 = vst.msk [vmem:[%s2273_s18 + $0x58] sm:$0xff] %vm1027_vm1, %v1015_v6 }
 0x267   : > { %v1017_v7 = vpop.f32.mrf.mxu3 }
 0x268   : > { %v1018_v8 = vadd.f32 %v1793_v46, %v1017_v7 }
 0x26a   : > { %1040 = vst.msk [vmem:[%s2273_s18 + $0x60] sm:$0xff] %vm1027_vm1, %v1018_v8 }
 0x26f   : > { %v1019_v9 = vpop.f32.mrf.mxu3 }
 0x270   : > { %v1020_v10 = vadd.f32 %v1793_v46, %v1019_v9 }
 0x272   : > { %1041 = vst.msk [vmem:[%s2273_s18 + $0x68] sm:$0xff] %vm1027_vm1, %v1020_v10 }
 0x277   : > { %v1022_v11 = vpop.f32.mrf.mxu3 }
 0x278   : > { %v1023_v12 = vadd.f32 %v1793_v46, %v1022_v11 }
 0x27a   : > { %1042 = vst.msk [vmem:[%s2273_s18 + $0x70] sm:$0xff] %vm1027_vm1, %v1023_v12 }
 0x27e   : > { %1050 = sbr.rel (!%p2017_p5) target bundleno = 691 (0x2b3), region = 114 }
 0x27f   : > { %v1024_v13 = vpop.f32.mrf.mxu3 }
 0x280   : > { %v1025_v14 = vadd.f32 %v1793_v46, %v1024_v13 }
 0x282   : > { %1043 = vst.msk [vmem:[%s2273_s18 + $0x78] sm:$0xff] %vm1027_vm1, %v1025_v14 }
 0x283   : > { %s2440_s30 = smov (!%p1053_p4, %s1052_s30), 16 }
 0x284   : > { %s1505_s17 = sshll.u32 %s2440_s30, 3 }
 0x285   : > { %p1508_p6 = scmp.eq.s32.totalorder %s1505_s17, 0 }
 0x286   : > { %s2320_s9 = sshrl.u32 (!%p1508_p6), %s2440_s30, 4 }
 0x287   : > { %1061 = sbr.rel (%p1508_p6) target bundleno = 691 (0x2b3), region = 118  ;;  %p1509_p5 = scmp.le.s32.totalorder (!%p1508_p6), %s2320_s9, 0 }
 0x28c   : > { %1342 = sbr.rel (%p1509_p5) target bundleno = 674 (0x2a2), region = 236  ;;  %s2425_s27 = smov (!%p1509_p5), %s2314_s13 }
 0x28d   : > { %s2426_s19 = smov (!%p1509_p5), %s2273_s18  ;;  %s2329_s20 = smov (!%p1509_p5), 0  }
 0x28e   : > { %s2331_s21 = smov (!%p1509_p5), 0  }
 0x291 LB: >> { %v1154_v15 = vld [vmem:[%s1920_s19] sm:$0xff]  ;;  %v1156_v16 = vld [vmem:[%s1920_s19 + $0x8] sm:$0xff]  ;;  %v1158_v17 = vld [vmem:[%s1920_s19 + $0x10] sm:$0xff]  ;;  %s1186_s23 = sadd.s32 1, %s1924_s20  ;;  %s1148_s21 = sadd.s32 1, %s1928_s21   ;;  %s1928_s21 = sphi %s2331_s21, %s1148_s21   ;;  %s1924_s20 = sphi %s2329_s20, %s2429_s20   ;;  %s1920_s19 = sphi %s2426_s19, %s2428_s19   ;;  %s1916_s27 = sphi %s2425_s27, %s2427_s27  }
 0x292   : >> { %1155 = vst [vmem:[%s1916_s27] sm:$0xff] %v1154_v15  ;;  %v1160_v18 = vld [vmem:[%s1920_s19 + $0x18] sm:$0xff]  ;;  %p1187_p7 = scmp.ge.s32.totalorder %s1186_s23, %s2320_s9  ;;  %v1162_v19 = vld [vmem:[%s1920_s19 + $0x20] sm:$0xff]  ;;  %v1164_v20 = vld [vmem:[%s1920_s19 + $0x28] sm:$0xff]  ;;  %p1147_p8 = scmp.ge.s32.totalorder %s1148_s21, %s2320_s9 }
 0x293   : >> { %1157 = vst [vmem:[%s1916_s27 + $0x8] sm:$0xff] %v1156_v16  ;;  %v1166_v21 = vld [vmem:[%s1920_s19 + $0x30] sm:$0xff]  ;;  %v1168_v22 = vld [vmem:[%s1920_s19 + $0x38] sm:$0xff]  ;;  %v1170_v23 = vld [vmem:[%s1920_s19 + $0x40] sm:$0xff] }
 0x294   : >> { %1159 = vst [vmem:[%s1916_s27 + $0x10] sm:$0xff] %v1158_v17  ;;  %s2442_s23 = smov (%p1187_p7, %s1186_s23), 0  ;;  %v1172_v24 = vld [vmem:[%s1920_s19 + $0x48] sm:$0xff]  ;;  %v1174_v25 = vld [vmem:[%s1920_s19 + $0x50] sm:$0xff]  ;;  %v1176_v26 = vld [vmem:[%s1920_s19 + $0x58] sm:$0xff] }
 0x295   : >> { %1161 = vst [vmem:[%s1916_s27 + $0x18] sm:$0xff] %v1160_v18  ;;  %s1510_s12 = sshll.u32 %s2442_s23, 7  ;;  %v1178_v27 = vld [vmem:[%s1920_s19 + $0x60] sm:$0xff]  ;;  %v1180_v28 = vld [vmem:[%s1920_s19 + $0x68] sm:$0xff]  ;;  %v1182_v29 = vld [vmem:[%s1920_s19 + $0x70] sm:$0xff]  ;;  %s2429_s20 = smov %s2442_s23 }
 0x296   : >> { %1163 = vst [vmem:[%s1916_s27 + $0x20] sm:$0xff] %v1162_v19  ;;  %s1191_s14 = scalar_lea.vmem %s2273_s18, %s1510_s12 [#allocation3]   ;;  %s1192_s24 = scalar_lea.vmem %s2314_s13, %s1510_s12   ;;  %v1184_v30 = vld [vmem:[%s1920_s19 + $0x78] sm:$0xff] }
 0x297   : >> { %1165 = vst [vmem:[%s1916_s27 + $0x28] sm:$0xff] %v1164_v20  ;;  %s2428_s19 = smov %s1191_s14 }
 0x298   : >> { %1167 = vst [vmem:[%s1916_s27 + $0x30] sm:$0xff] %v1166_v21 }
 0x299   : >> { %1169 = vst [vmem:[%s1916_s27 + $0x38] sm:$0xff] %v1168_v22 }
 0x29a   : >> { %1171 = vst [vmem:[%s1916_s27 + $0x40] sm:$0xff] %v1170_v23 }
 0x29b   : >> { %1173 = vst [vmem:[%s1916_s27 + $0x48] sm:$0xff] %v1172_v24 }
 0x29c   : >> { %1175 = vst [vmem:[%s1916_s27 + $0x50] sm:$0xff] %v1174_v25 }
 0x29d   : >> { %1177 = vst [vmem:[%s1916_s27 + $0x58] sm:$0xff] %v1176_v26  ;;  %1150 = sbr.rel (!%p1147_p8) target bundleno = 657 (0x291), region = 242 }
 0x29e   : >> { %1179 = vst [vmem:[%s1916_s27 + $0x60] sm:$0xff] %v1178_v27 }
 0x29f   : >> { %1181 = vst [vmem:[%s1916_s27 + $0x68] sm:$0xff] %v1180_v28 }
 0x2a0   : >> { %1183 = vst [vmem:[%s1916_s27 + $0x70] sm:$0xff] %v1182_v29 }
 0x2a1   : >> { %1185 = vst [vmem:[%s1916_s27 + $0x78] sm:$0xff] %v1184_v30  ;;  %s2427_s27 = smov %s1192_s24 }
 0x2a2 PF: > { %s2393_s26 = sand.u32 15, %s2440_s30   ;;  %s1542_s15 = sshll.u32 %s2320_s9, 7 }
 0x2a3   : > { %s1197_s16 = scalar_lea.vmem %s2273_s18, %s1542_s15 [#allocation3]   ;;  %s1199_s22 = scalar_lea.vmem %s2314_s13, %s1542_s15  }
 0x2a4   : > { %p1515_p9 = scmp.le.s32.totalorder %s2393_s26, 0 }
 0x2a5   : > { %s1930_s10 = smov (!%p1515_p9), %s1199_s22   ;;  %s1934_s11 = smov (!%p1515_p9), %s1197_s16  }
 0x2a6   : > { %1356 = sbr.rel (%p1515_p9) target bundleno = 691 (0x2b3), region = 247  ;;  %s1938_s29 = smov (!%p1515_p9), 0  }
 0x2a7   : > { %s1942_s17 = smov (!%p1515_p9), 0  }
 0x2ab LB: >> { %v1209_v31 = vld [vmem:[%s1936_s11] sm:$0xff]  ;;  %s1211_s30 = sadd.s32 1, %s1940_s29  ;;  %s1203_s17 = sadd.s32 1, %s1944_s17   ;;  %s1944_s17 = sphi %s1942_s17, %s1203_s17   ;;  %s1940_s29 = sphi %s1938_s29, %s1939_s29   ;;  %s1936_s11 = sphi %s1934_s11, %s1216_s11   ;;  %s1932_s10 = sphi %s1930_s10, %s1217_s10  }
 0x2ac   : >> { %1210 = vst [vmem:[%s1932_s10] sm:$0xff] %v1209_v31  ;;  %p1212_p10 = scmp.ge.s32.totalorder %s1211_s30, %s2393_s26  ;;  %p1202_p11 = scmp.ge.s32.totalorder %s1203_s17, %s2393_s26 }
 0x2ae   : >> { %s2444_s30 = smov (%p1212_p10, %s1211_s30), 0  ;;  %1205 = sbr.rel (!%p1202_p11) target bundleno = 683 (0x2ab), region = 253 }
 0x2af   : >> { %s1516_s18 = sshll.u32 %s2444_s30, 3  ;;  %s1939_s29 = smov %s2444_s30  }
 0x2b0   : >> { %s1216_s11 = scalar_lea.vmem %s1197_s16, %s1516_s18 [#allocation3]   ;;  %s1217_s10 = scalar_lea.vmem %s1199_s22, %s1516_s18  }
 0x2b3 PF: > { %p14_p12 = scmp.ge.s32.totalorder %s2005_s28, 4   ;;  %s2430_s24 = smov %s1876_s25 }
 0x2b4   : > { %s2431_s25 = smov %s2015_s8  ;;  %s2432_s26 = smov %s2005_s28 }
 0x2b5   :  { %16 = sbr.rel (!%p14_p12) target bundleno = 2 (0x2), region = 264 }

</bundles_post_ra>
